<compile_context>
chip_gen: v6e
topology: v6e:2x2x1
jax: 0.10.0
libtpu: 0.0.40
codegen_flags: <defaults>
</compile_context>

<pallas_src>
import math

import jax
import jax.numpy as jnp
from jax.experimental import pallas as pl
from jax.experimental.pallas import tpu as pltpu

FILL_VALUE = -100.0
FREQ_SCALES = (0.1, 0.5)
TIME_SCALES = (0.1, 0.5)

_TARGET_BLOCK_BYTES = 2 * 1024 * 1024      # ~2 MiB per (BN, F*T) block
_VMEM_LIMIT_BYTES = 32 * 1024 * 1024       # safe on v5e / v6e / v7x


def _cutout_kernel(mask_ref, x_ref, o_ref):
    # mask_ref: int32 (1, FT), nonzero inside the cutout rectangle (resident).
    # x_ref / o_ref: (BN, FT) blocks of the flattened input / output.
    inside = mask_ref[...] != 0
    x = x_ref[...]
    fill = jnp.asarray(FILL_VALUE, dtype=x.dtype)
    o_ref[...] = jnp.where(inside, fill, x)


def _gen_range(key, size: int, scales):
    """JAX equivalent of the PyTorch gen_range: returns (start, end) int32."""
    cutout_size_min = math.ceil(scales[0] * size)
    cutout_size_max = max(math.ceil(scales[1] * size), cutout_size_min + 1)
    k1, k2 = jax.random.split(key)
    cutout_size = jax.random.randint(k1, (), cutout_size_min, cutout_size_max)
    start = jax.random.randint(k2, (), 0, jnp.maximum(size - cutout_size + 1, 1))
    end = start + cutout_size
    return start.astype(jnp.int32), end.astype(jnp.int32)


def _pick_block_rows(n_rows: int, row_bytes: int) -> int:
    """Rows per block: ~_TARGET_BLOCK_BYTES per block, sublane(8)-aligned."""
    bn = max(1, _TARGET_BLOCK_BYTES // max(row_bytes, 1))
    if bn >= n_rows or n_rows < 8:
        return n_rows                      # whole tensor in a single block
    return max(8, (bn // 8) * 8)           # multiple of 8, <= n_rows


def cutout_spec(x, key):
    """Apply CutOutSpec (constant fill, p=1.0) to x of shape (..., F, T)."""
    orig_shape = x.shape
    F, T = orig_shape[-2], orig_shape[-1]
    N = 1
    for d in orig_shape[:-2]:
        N *= d
    FT = F * T
    x_flat = x.reshape((N, FT))            # lane-dense last axis

    # Sample the cutout rectangle (same semantics as the PyTorch gen_range).
    kf, kt = jax.random.split(key)
    f0, f1 = _gen_range(kf, F, FREQ_SCALES)
    t0, t1 = _gen_range(kt, T, TIME_SCALES)

    # Precompute the (1, F*T) rectangle mask once on the XLA side; constant
    # index_map below means it is DMA'd once and stays resident in VMEM.
    fi = jnp.arange(F, dtype=jnp.int32)[:, None]
    ti = jnp.arange(T, dtype=jnp.int32)[None, :]
    mask = (fi >= f0) & (fi < f1) & (ti >= t0) & (ti < t1)
    mask = mask.astype(jnp.int32).reshape((1, FT))

    bn = _pick_block_rows(N, FT * x.dtype.itemsize)
    grid = (pl.cdiv(N, bn),)

    out = pl.pallas_call(
        _cutout_kernel,
        out_shape=jax.ShapeDtypeStruct((N, FT), x.dtype),
        grid_spec=pltpu.PrefetchScalarGridSpec(
            num_scalar_prefetch=0,
            grid=grid,
            in_specs=[
                pl.BlockSpec((1, FT), lambda i: (0, 0)),    # resident mask
                pl.BlockSpec((bn, FT), lambda i: (i, 0)),   # data rows
            ],
            out_specs=pl.BlockSpec((bn, FT), lambda i: (i, 0)),
        ),
        compiler_params=pltpu.CompilerParams(
            dimension_semantics=("parallel",),
            vmem_limit_bytes=_VMEM_LIMIT_BYTES,
        ),
    )(mask, x_flat)

    return out.reshape(orig_shape)


def _reference(x, key):
    """Pure-jnp reference using the same RNG stream as cutout_spec."""
    F, T = x.shape[-2], x.shape[-1]
    kf, kt = jax.random.split(key)
    f0, f1 = _gen_range(kf, F, FREQ_SCALES)
    t0, t1 = _gen_range(kt, T, TIME_SCALES)
    fi = jnp.arange(F)[:, None]
    ti = jnp.arange(T)[None, :]
    m = (fi >= f0) & (fi < f1) & (ti >= t0) & (ti < t1)
    return jnp.where(m, jnp.asarray(FILL_VALUE, x.dtype), x), (f0, f1, t0, t1)


if __name__ == "__main__":
    key = jax.random.PRNGKey(0)
    k_data, k_aug, k_data2, k_aug2 = jax.random.split(key, 4)

    # --- small demo shape (single-block path) ---
    B, C, F, T = 2, 4, 16, 16
    x = jax.random.normal(k_data, (B, C, F, T), dtype=jnp.float32)
    y = jax.block_until_ready(cutout_spec(x, k_aug))

    ref, (f0, f1, t0, t1) = _reference(x, k_aug)
    assert y.shape == x.shape and y.dtype == x.dtype
    assert bool(jnp.array_equal(y, ref))
    assert bool(jnp.all(y[..., int(f0):int(f1), int(t0):int(t1)] == FILL_VALUE))

    # --- larger shape exercising the tiled (multi-block, parallel-grid) path ---
    B2, C2, F2, T2 = 16, 8, 64, 128         # N=128 rows, 32 KiB/row -> 2 blocks
    x2 = jax.random.normal(k_data2, (B2, C2, F2, T2), dtype=jnp.float32)
    y2 = jax.block_until_ready(cutout_spec(x2, k_aug2))
    ref2, _ = _reference(x2, k_aug2)
    assert y2.shape == x2.shape and y2.dtype == x2.dtype
    assert bool(jnp.array_equal(y2, ref2))

    print("KERNEL_OK")
</pallas_src>

<mosaic_0001>
module attributes {stable_mosaic.version = 11 : i64} {
  func.func @_cutout_kernel(%arg0: i32, %arg1: memref<1x256xi32, #tpu.memory_space<vmem>>, %arg2: memref<8x256xf32, #tpu.memory_space<vmem>>, %arg3: memref<8x256xf32, #tpu.memory_space<vmem>>) attributes {dimension_semantics = [#tpu.dimension_semantics<parallel>], iteration_bounds = array<i64: 1>, scalar_prefetch = 0 : i64, scratch_operands = 0 : i64, tpu.core_type = #tpu.core_type<tc>, window_params = [{pipeline_mode = #tpu.pipeline_mode<synchronous>, transform_indices = @transform_0, window_bounds = array<i64: 1, 256>}, {transform_indices = @transform_1, window_bounds = array<i64: 8, 256>}, {transform_indices = @transform_2, window_bounds = array<i64: 8, 256>}]} {
    %c0 = arith.constant 0 : index
    %c0_0 = arith.constant 0 : index
    %0 = vector.load %arg1[%c0, %c0_0] : memref<1x256xi32, #tpu.memory_space<vmem>>, vector<1x256xi32>
    %c0_i32 = arith.constant 0 : i32
    %1 = vector.broadcast %c0_i32 : i32 to vector<1x256xi32>
    %2 = arith.cmpi ne, %0, %1 : vector<1x256xi32>
    %c0_1 = arith.constant 0 : index
    %c0_2 = arith.constant 0 : index
    %3 = vector.load %arg2[%c0_1, %c0_2] : memref<8x256xf32, #tpu.memory_space<vmem>>, vector<8x256xf32>
    %cst = arith.constant -1.000000e+02 : f32
    %4 = vector.shape_cast %2 : vector<1x256xi1> to vector<1x256xi1>
    %5 = vector.broadcast %4 : vector<1x256xi1> to vector<8x256xi1>
    %6 = vector.broadcast %cst : f32 to vector<8x256xf32>
    %7 = arith.select %5, %6, %3 : vector<8x256xi1>, vector<8x256xf32>
    %c0_3 = arith.constant 0 : index
    %c0_4 = arith.constant 0 : index
    %8 = vector.load %arg3[%c0_3, %c0_4] : memref<8x256xf32, #tpu.memory_space<vmem>>, vector<8x256xf32>
    tpu.vector_store %arg3[%c0_3, %c0_4], %7 {strides = array<i32>} : memref<8x256xf32, #tpu.memory_space<vmem>>, vector<8x256xf32>,
    return
  }
  func.func @transform_0(%arg0: i32) -> (i32, i32) {
    %c0_i32 = arith.constant 0 : i32
    %c0_i32_0 = arith.constant 0 : i32
    %c0_i32_1 = arith.constant 0 : i32
    return %c0_i32, %c0_i32_0 : i32, i32
  }
  func.func @transform_1(%arg0: i32) -> (i32, i32) {
    %c0_i32 = arith.constant 0 : i32
    %c0_i32_0 = arith.constant 0 : i32
    return %arg0, %c0_i32 : i32, i32
  }
  func.func @transform_2(%arg0: i32) -> (i32, i32) {
    %c0_i32 = arith.constant 0 : i32
    %c0_i32_0 = arith.constant 0 : i32
    return %arg0, %c0_i32 : i32, i32
  }
}

</mosaic_0001>

<bundles_post_ra>
// kernel: tpu_custom_call.1
= control target key start
LH: loop header
LB: loop body
LE: loop exit
PB: predicated region body
PF: predicated region fallthrough
CT: control target
= control target key end

     0   :  { %7 = vsyncpa [#allocation3], 0  ;;  %s169_s0 = inlined_call_operand.hbm [shape: s32[1,256], index: 0, kind: input, shape index: {}]   ;;  %s170_s1 = inlined_call_operand.hbm [shape: f32[8,256], index: 1, kind: input, shape index: {}]   ;;  %s171_s2 = inlined_call_operand.hbm [shape: f32[8,256], index: 2, kind: output, shape index: {}]  }
   0x1   :  { %8 = vsyncpa [#allocation6], 0 }
   0x2   :  { %9 = vsyncpa [#allocation4], 0  ;;  %s141_s9 = smov [#allocation2]   ;;  %s142_s11 = smov [#allocation5]  }
   0x3   :  { %s16_s10 = sshll.u32 %s141_s9, 4  ;;  %s26_s12 = sshll.u32 %s142_s11, 4  ;;  %s17_s10 = int_to_ptr.vmem [resolvable:$true] %s16_s10  ;;  %s27_s12 = int_to_ptr.vmem [resolvable:$true] %s26_s12 }
   0x4   :  { %s83_s13 = scalar_lea.vmem %s17_s10, 32  ;;  %p88_p1 = scmp.lt.s32.totalorder %s17_s10, %s17_s10 }
   0x5   :  { %p84_p0 = scmp.ne.s32.totalorder %s17_s10, %s83_s13  ;;  %p89_p2 = scmp.lt.s32.totalorder %s83_s13, %s83_s13 }
   0x7   :  { %p90_p3 = por %p89_p2, %p88_p1 }
   0x9   :  { %p91_p4 = pnand %p90_p3, %p84_p0 }
   0xb   :  { %94 = shalt.err (!%p91_p4)
}
   0xc   :  { %19 = dma.hbm_to_vmem [thread:$0]  %s169_s0, 32, %s17_s10, [#allocation3]  }
   0xd   :  { %s103_s16 = scalar_lea.vmem %s27_s12, 256  ;;  %p108_p6 = scmp.lt.s32.totalorder %s27_s12, %s27_s12 }
   0xe   :  { %p104_p5 = scmp.ne.s32.totalorder %s27_s12, %s103_s16  ;;  %p109_p7 = scmp.lt.s32.totalorder %s103_s16, %s103_s16 }
  0x10   :  { %p110_p8 = por %p109_p7, %p108_p6 }
  0x12   :  { %p111_p9 = pnand %p110_p8, %p104_p5 }
  0x14   :  { %114 = shalt.err (!%p111_p9)
}
  0x15   :  { %29 = dma.hbm_to_vmem [thread:$0]  %s170_s1, 256, %s27_s12, [#allocation6]  }
  0x16   :  { %135 = dma.done.wait [#allocation3], 32  }
  0x17   :  { %136 = vsyncadd [#allocation3], 4294967264 }
  0x18   :  { %137 = dma.done.wait [#allocation6], 256  }
  0x19   :  { %138 = vsyncadd [#allocation6], 4294967040  ;;  %v41_v0 = vlaneseq  ;;  %v36_v4 = vld [vmem:[#allocation2] sm:$0x3]  ;;  %v143_v5 = vmov 0   ;;  %s144_s0 = smov [#allocation7]  }
  0x1a   :  { %vm37_vm0 = vcmp.ne.s32.totalorder %v36_v4, 0  ;;  %s61_s19 = sshll.u32 %s144_s0, 4  ;;  %v38_v7 = vld [vmem:[#allocation5] sm:$0xff]  ;;  %v39_v9 = vld [vmem:[#allocation5 + $0x8] sm:$0xff]  ;;  %s62_s19 = int_to_ptr.vmem [resolvable:$true] %s61_s19 }
  0x1b   :  { %v42_v1 = vshrl.u32 %v41_v0, 7  ;;  %v40_v6 = vsel %vm37_vm0, 1, %v143_v5  ;;  %s115_s1 = scalar_lea.vmem %s62_s19, 256  ;;  %p120_p11 = scmp.lt.s32.totalorder %s62_s19, %s62_s19 }
  0x1c   :  { %p116_p10 = scmp.ne.s32.totalorder %s62_s19, %s115_s1  ;;  %p121_p12 = scmp.lt.s32.totalorder %s115_s1, %s115_s1 }
  0x1d   :  { %v43_v2 = vsub.s32 0, %v42_v1  ;;  %v47_v3 = vsub.s32 1, %v42_v1 }
  0x1e   :  { %p122_p13 = por %p121_p12, %p120_p11 }
  0x1f   :  { %v44_v8 = vrot.slane %v40_v6, %v43_v2  ;;  %v48_v10 = vrot.slane %v40_v6, %v47_v3 }
  0x20   :  { %p123_p0 = pnand %p122_p13, %p116_p10 }
  0x21   :  { %vm49_vm1 = vcmp.eq.s32.totalorder %v44_v8, 1  ;;  %vm50_vm2 = vcmp.eq.s32.totalorder %v48_v10, 1 }
  0x22   :  { %v51_v11 = vsel %vm49_vm1, -100.0, %v38_v7  ;;  %v52_v12 = vsel %vm50_vm2, -100.0, %v39_v9 }
  0x23   :  { %53 = vst [vmem:[#allocation7] sm:$0xff] %v51_v11  ;;  %54 = vst [vmem:[#allocation7 + $0x8] sm:$0xff] %v52_v12 }
  0x24   :  { %126 = shalt.err (!%p123_p0)
}
  0x25   :  { %64 = dma.vmem_to_hbm [thread:$0]  %s62_s19, 256, %s171_s2, [#allocation4]  }
  0x26   :  { %139 = dma.done.wait [#allocation4], 256  }
  0x27   :  { %140 = vsyncadd [#allocation4], 4294967040 }
  0x28   :  { %68 = vsyncpa [#allocation3], 1 }
  0x29   :  { %69 = vsyncpa [#allocation6], 1 }
  0x2a   :  { %70 = vsyncpa [#allocation4], 1 }

</bundles_post_ra>
